<compile_context>
chip_gen: v5e
topology: v5e:2x2
jax: 0.10.0
libtpu: 0.0.40
codegen_flags: <defaults>
</compile_context>

<pallas_src>
import functools

import jax
import jax.numpy as jnp
from jax.experimental import pallas as pl
from jax.experimental.pallas import tpu as pltpu

D_IN = 4       # data dimension (TrajectoryNet uses low-dim point clouds)
HID = 32       # hidden width of the ODEnet (also the padded feature width)
B = 16         # batch
N_LAYERS = 3   # concatsquash layers


# -----------------------------------------------------------------------------
# Shared kernel body
# -----------------------------------------------------------------------------
def _concatsquash_mlp(x, t, w_ref, v_ref):
    """3-layer concatsquash MLP body.

    x: (B, d) f32 with d <= HID.  t: f32 scalar (from SMEM).
    w_ref: (N_LAYERS, HID, HID) zero-padded weights (t-invariant MXU operand).
    v_ref: (5*N_LAYERS, HID) rows = [b x3, gw x3, gb x3, hw x3, hb x3].
    Returns (B, HID); columns >= last-layer width are exactly 0 thanks to the
    zero-padding invariant of pack_params (gate*0 + 0 bias).
    """
    nl = w_ref.shape[0]
    v = v_ref[...]
    b_all = v[0:nl]                                            # (nl, HID)
    # Hoisted out of the layer loop: one EUP sigmoid push + 2 VPU FMAs.
    gates = jax.nn.sigmoid(v[nl:2 * nl] * t + v[2 * nl:3 * nl])    # (nl, HID)
    biases = v[3 * nl:4 * nl] * t + v[4 * nl:5 * nl]               # (nl, HID)
    for li in range(nl):                                       # static unroll
        w = w_ref[li]                                          # (HID, HID)
        if x.shape[1] < w.shape[0]:
            w = w[:x.shape[1], :]                              # raw (B,D_IN) input
        h = jnp.dot(x, w, preferred_element_type=jnp.float32)  # MXU
        x = (h + b_all[li:li + 1, :]) * gates[li:li + 1, :] + biases[li:li + 1, :]
        if li < nl - 1:
            x = jnp.tanh(x)
    return x


# -----------------------------------------------------------------------------
# Single diffeq evaluation (mirrors VanillaODEfunc.forward's diffeq call)
# -----------------------------------------------------------------------------
def diffeq_kernel(t_ref, z_ref, w_ref, v_ref, out_ref):
    t = t_ref[0]                               # scalar from SMEM
    x = z_ref[...].astype(jnp.float32)         # (B, D_IN), no wrapper pad
    out_ref[...] = _concatsquash_mlp(x, t, w_ref, v_ref).astype(out_ref.dtype)


@jax.jit
def diffeq_pallas(t, z, wstack, vstack):
    bsz, d = z.shape
    t_arr = jnp.asarray(t, dtype=jnp.float32).reshape(1)
    out = pl.pallas_call(
        diffeq_kernel,
        out_shape=jax.ShapeDtypeStruct((bsz, HID), jnp.float32),
        in_specs=[
            pl.BlockSpec(memory_space=pltpu.MemorySpace.SMEM),   # t (1,)
            pl.BlockSpec(memory_space=pltpu.MemorySpace.VMEM),   # z (B, D_IN)
            pl.BlockSpec(memory_space=pltpu.MemorySpace.VMEM),   # wstack
            pl.BlockSpec(memory_space=pltpu.MemorySpace.VMEM),   # vstack
        ],
        out_specs=pl.BlockSpec(memory_space=pltpu.MemorySpace.VMEM),
    )(t_arr, z, wstack, vstack)
    # Lane-dense store inside the kernel; slice off the pad columns here.
    return out[:, :d].astype(z.dtype)


# -----------------------------------------------------------------------------
# Fused solver loop: N Euler steps of the diffeq inside ONE pallas_call.
# Parameters are DMA'd once (constant index_maps) and stay VMEM-resident;
# the z state is carried across grid steps in a VMEM scratch; t is streamed
# via scalar prefetch (SMEM).
# -----------------------------------------------------------------------------
def fused_euler_kernel(ts_ref, dt_ref, z0_ref, w_ref, v_ref, zout_ref, z_sc):
    step = pl.program_id(0)

    @pl.when(step == 0)
    def _():
        z_sc[...] = z0_ref[...]                # padded initial state

    t = ts_ref[step]                           # SMEM scalar prefetch
    x = z_sc[...]                              # (B, HID), pad cols are 0
    dz = _concatsquash_mlp(x, t, w_ref, v_ref)
    z_new = x + dt_ref[0] * dz
    z_sc[...] = z_new
    zout_ref[...] = z_new                      # constant out block, written back once


@functools.partial(jax.jit, static_argnames=("num_steps",))
def euler_integrate_pallas(t0, t1, z, wstack, vstack, *, num_steps):
    bsz, d = z.shape
    t0 = jnp.asarray(t0, jnp.float32)
    t1 = jnp.asarray(t1, jnp.float32)
    dt = (t1 - t0) / num_steps
    ts = t0 + dt * jnp.arange(num_steps, dtype=jnp.float32)
    # One pad for the whole integration (not per eval).
    z0 = jnp.pad(z.astype(jnp.float32), ((0, 0), (0, HID - d)))

    grid_spec = pltpu.PrefetchScalarGridSpec(
        num_scalar_prefetch=2,                 # ts, dt -> SMEM
        grid=(num_steps,),
        in_specs=[
            pl.BlockSpec((bsz, HID), lambda s, ts, dt: (0, 0)),            # z0
            pl.BlockSpec((N_LAYERS, HID, HID), lambda s, ts, dt: (0, 0, 0)),  # W
            pl.BlockSpec((5 * N_LAYERS, HID), lambda s, ts, dt: (0, 0)),   # vecs
        ],
        out_specs=pl.BlockSpec((bsz, HID), lambda s, ts, dt: (0, 0)),
        scratch_shapes=[pltpu.VMEM((bsz, HID), jnp.float32)],
    )
    out = pl.pallas_call(
        fused_euler_kernel,
        out_shape=jax.ShapeDtypeStruct((bsz, HID), jnp.float32),
        grid_spec=grid_spec,
        compiler_params=pltpu.CompilerParams(
            dimension_semantics=("arbitrary",)),   # sequential solver steps
    )(ts, dt.reshape(1), z0, wstack, vstack)
    return out[:, :d].astype(z.dtype)


# -----------------------------------------------------------------------------
# Parameters (synthetic, deterministic) and host-side packing
# -----------------------------------------------------------------------------
def init_params(key):
    dims = [(D_IN, HID), (HID, HID), (HID, D_IN)]
    params = []
    for li, (din, dout) in enumerate(dims):
        k = jax.random.fold_in(key, li)
        kw, kb, kgw, kgb, khw, khb = jax.random.split(k, 6)
        scale = 1.0 / jnp.sqrt(jnp.float32(din))
        w = jax.random.uniform(kw, (din, dout), jnp.float32, -scale, scale)
        b = jax.random.uniform(kb, (1, dout), jnp.float32, -scale, scale)
        gw = jax.random.normal(kgw, (1, dout), jnp.float32) * 0.1
        gb = jax.random.normal(kgb, (1, dout), jnp.float32) * 0.1
        hw = jax.random.normal(khw, (1, dout), jnp.float32) * 0.1
        hb = jax.random.normal(khb, (1, dout), jnp.float32) * 0.1
        params.append((w, b, gw, gb, hw, hb))
    return params


def pack_params(params, pd=HID):
    """Pack 18 tiny arrays into two zero-padded slabs.

    wstack: (n_layers, pd, pd)  — zero-padded weight matrices.
    vstack: (5*n_layers, pd)    — rows [0:n)=b, [n:2n)=gw, [2n:3n)=gb,
                                  [3n:4n)=hw, [4n:5n)=hb.
    Zero-padding invariant: padded columns of the LAST layer's b/gw/gb/hw/hb
    rows stay zero so the kernel's padded output columns are exactly 0.
    """
    n = len(params)
    wstack = jnp.zeros((n, pd, pd), jnp.float32)
    vstack = jnp.zeros((5 * n, pd), jnp.float32)
    for li, (w, b, gw, gb, hw, hb) in enumerate(params):
        din, dout = w.shape
        assert din <= pd and dout <= pd
        wstack = wstack.at[li, :din, :dout].set(w)
        for vi, vec in enumerate((b, gw, gb, hw, hb)):
            vstack = vstack.at[vi * n + li, :dout].set(vec.reshape(-1))
    # Document/assert the zero-pad invariant (correctness concern #3).
    last_dout = params[-1][0].shape[1]
    assert bool(jnp.all(vstack[:, last_dout:][jnp.array([n - 1, 2 * n - 1,
                                                         3 * n - 1, 4 * n - 1,
                                                         5 * n - 1])] == 0))
    return wstack, vstack


# -----------------------------------------------------------------------------
# Pure-JAX references
# -----------------------------------------------------------------------------
def diffeq_ref(t, z, params):
    x = z.astype(jnp.float32)
    t = jnp.asarray(t, jnp.float32)
    hp = jax.lax.Precision.HIGHEST
    for li, (w, b, gw, gb, hw, hb) in enumerate(params):
        x = ((jnp.dot(x, w, precision=hp) + b) * jax.nn.sigmoid(gw * t + gb)
             + (hw * t + hb))
        if li < len(params) - 1:
            x = jnp.tanh(x)
    return x.astype(z.dtype)


def euler_integrate_ref(t0, t1, z, params, *, num_steps):
    t0 = jnp.asarray(t0, jnp.float32)
    t1 = jnp.asarray(t1, jnp.float32)
    dt = (t1 - t0) / num_steps
    x = z
    for k in range(num_steps):
        t = t0 + dt * jnp.float32(k)
        x = x + dt * diffeq_ref(t, x, params)
    return x


# -----------------------------------------------------------------------------
# Module port
# -----------------------------------------------------------------------------
class VanillaODEfuncPallas:
    """JAX/Pallas port of TrajectoryNet's VanillaODEfunc."""

    def __init__(self, params, rademacher=False):
        self.params = params
        self.wstack, self.vstack = pack_params(params)
        self.rademacher = rademacher
        self._num_evals = jnp.float32(0.0)   # buffer '_num_evals'
        self._e = None

    def before_odeint(self, e=None):
        self._e = e
        self._num_evals = jnp.float32(0.0)

    def forward(self, t, states):
        assert isinstance(states, tuple), "pass in tupled states to ODEfunc"
        z = states[0]
        # TODO(synk): Python-side mutation of _num_evals/_e goes stale under
        # jax.jit / traced odeint loops and the fixed PRNGKey(1234) reuses the
        # same noise every before_odeint(None); kept only to mirror torch.
        self._num_evals = self._num_evals + 1.0
        if self._e is None:
            key = jax.random.PRNGKey(1234)
            if self.rademacher:
                self._e = (jax.random.randint(key, z.shape, 0, 2)
                           .astype(z.dtype) * 2 - 1)
            else:
                self._e = jax.random.normal(key, z.shape, dtype=z.dtype)
        # TODO(synk): torch requires_grad_/set_grad_enabled bookkeeping has no
        # Pallas equivalent; gradients in JAX come from jax.grad over this fn.
        dz = diffeq_pallas(t, z, self.wstack, self.vstack)
        return tuple([dz] + [jnp.zeros_like(s) for s in states[1:]])

    def integrate(self, t0, t1, z, *, num_steps):
        """Fused-solver convenience: N Euler evals of diffeq in one pallas_call."""
        return euler_integrate_pallas(t0, t1, z, self.wstack, self.vstack,
                                      num_steps=num_steps)


if __name__ == "__main__":
    key = jax.random.PRNGKey(0)
    kp, kz = jax.random.split(key, 2)

    params = init_params(kp)
    z = jax.random.normal(kz, (B, D_IN), dtype=jnp.float32)
    logpz = jnp.zeros((B, 1), dtype=jnp.float32)   # extra state, gets zeros back
    t = jnp.float32(0.3)

    odefunc = VanillaODEfuncPallas(params, rademacher=False)
    odefunc.before_odeint()

    # Single-eval forward (module semantics).
    dz, dlogpz = odefunc.forward(t, (z, logpz))
    jax.block_until_ready(dz)
    jax.block_until_ready(dlogpz)

    ref = diffeq_ref(t, z, params)
    assert dz.shape == z.shape and dz.dtype == z.dtype
    assert dlogpz.shape == logpz.shape
    assert jnp.allclose(dz, ref, atol=1e-4, rtol=1e-4), \
        float(jnp.max(jnp.abs(dz - ref)))
    assert jnp.all(dlogpz == 0)

    # Fused solver loop: 8 Euler steps of the same diffeq in one pallas_call.
    num_steps = 8
    z_T = odefunc.integrate(jnp.float32(0.0), jnp.float32(1.0), z,
                            num_steps=num_steps)
    jax.block_until_ready(z_T)
    z_T_ref = euler_integrate_ref(jnp.float32(0.0), jnp.float32(1.0), z, params,
                                  num_steps=num_steps)
    assert z_T.shape == z.shape
    assert jnp.allclose(z_T, z_T_ref, atol=5e-4, rtol=5e-4), \
        float(jnp.max(jnp.abs(z_T - z_T_ref)))

    print("KERNEL_OK")
</pallas_src>

<mosaic_0001>
module attributes {stable_mosaic.version = 11 : i64} {
  func.func @diffeq_kernel(%arg0: memref<1xf32, #tpu.memory_space<smem>>, %arg1: memref<16x4xf32, #tpu.memory_space<vmem>>, %arg2: memref<3x32x32xf32, #tpu.memory_space<vmem>>, %arg3: memref<15x32xf32, #tpu.memory_space<vmem>>, %arg4: memref<16x32xf32, #tpu.memory_space<vmem>>) attributes {dimension_semantics = [], scalar_prefetch = 0 : i64, scratch_operands = 0 : i64, tpu.core_type = #tpu.core_type<tc>} {
    %c0 = arith.constant 0 : index
    %0 = memref.load %arg0[%c0] : memref<1xf32, #tpu.memory_space<smem>>
    %c0_0 = arith.constant 0 : index
    %c0_1 = arith.constant 0 : index
    %1 = vector.load %arg1[%c0_0, %c0_1] : memref<16x4xf32, #tpu.memory_space<vmem>>, vector<16x4xf32>
    %c0_2 = arith.constant 0 : index
    %c0_3 = arith.constant 0 : index
    %2 = vector.load %arg3[%c0_2, %c0_3] : memref<15x32xf32, #tpu.memory_space<vmem>>, vector<15x32xf32>
    %3 = vector.extract_strided_slice %2 {offsets = [0, 0], sizes = [3, 32], strides = [1, 1]} : vector<15x32xf32> to vector<3x32xf32>
    %4 = vector.extract_strided_slice %2 {offsets = [3, 0], sizes = [3, 32], strides = [1, 1]} : vector<15x32xf32> to vector<3x32xf32>
    %5 = vector.broadcast %0 : f32 to vector<3x32xf32>
    %6 = arith.mulf %4, %5 : vector<3x32xf32>
    %7 = vector.extract_strided_slice %2 {offsets = [6, 0], sizes = [3, 32], strides = [1, 1]} : vector<15x32xf32> to vector<3x32xf32>
    %8 = arith.addf %6, %7 : vector<3x32xf32>
    %9 = arith.negf %8 : vector<3x32xf32>
    %10 = math.exp %9 : vector<3x32xf32>
    %cst = arith.constant 1.000000e+00 : f32
    %11 = vector.broadcast %cst : f32 to vector<3x32xf32>
    %12 = arith.addf %11, %10 : vector<3x32xf32>
    %13 = arith.divf %11, %12 : vector<3x32xf32>
    %14 = vector.extract_strided_slice %2 {offsets = [9, 0], sizes = [3, 32], strides = [1, 1]} : vector<15x32xf32> to vector<3x32xf32>
    %15 = vector.broadcast %0 : f32 to vector<3x32xf32>
    %16 = arith.mulf %14, %15 : vector<3x32xf32>
    %17 = vector.extract_strided_slice %2 {offsets = [12, 0], sizes = [3, 32], strides = [1, 1]} : vector<15x32xf32> to vector<3x32xf32>
    %18 = arith.addf %16, %17 : vector<3x32xf32>
    %c0_4 = arith.constant 0 : index
    %c0_5 = arith.constant 0 : index
    %c0_6 = arith.constant 0 : index
    %19 = vector.load %arg2[%c0_4, %c0_5, %c0_6] : memref<3x32x32xf32, #tpu.memory_space<vmem>>, vector<1x32x32xf32>
    %20 = vector.shape_cast %19 : vector<1x32x32xf32> to vector<32x32xf32>
    %21 = vector.extract_strided_slice %20 {offsets = [0, 0], sizes = [4, 32], strides = [1, 1]} : vector<32x32xf32> to vector<4x32xf32>
    %cst_7 = arith.constant dense<0.000000e+00> : vector<16x32xf32>
    %22 = tpu.matmul %1, %21, %cst_7 {dimension_numbers = #tpu.dot_dimension_numbers<[1], [0], [0], [1], [0, 0, 1, 1], [], []>} : vector<16x4xf32>, vector<4x32xf32>, vector<16x32xf32> -> vector<16x32xf32>
    %23 = vector.extract_strided_slice %3 {offsets = [0, 0], sizes = [1, 32], strides = [1, 1]} : vector<3x32xf32> to vector<1x32xf32>
    %24 = vector.broadcast %23 : vector<1x32xf32> to vector<16x32xf32>
    %25 = arith.addf %22, %24 : vector<16x32xf32>
    %26 = vector.extract_strided_slice %13 {offsets = [0, 0], sizes = [1, 32], strides = [1, 1]} : vector<3x32xf32> to vector<1x32xf32>
    %27 = vector.broadcast %26 : vector<1x32xf32> to vector<16x32xf32>
    %28 = arith.mulf %25, %27 : vector<16x32xf32>
    %29 = vector.extract_strided_slice %18 {offsets = [0, 0], sizes = [1, 32], strides = [1, 1]} : vector<3x32xf32> to vector<1x32xf32>
    %30 = vector.broadcast %29 : vector<1x32xf32> to vector<16x32xf32>
    %31 = arith.addf %28, %30 : vector<16x32xf32>
    %32 = math.tanh %31 : vector<16x32xf32>
    %c1 = arith.constant 1 : index
    %c0_8 = arith.constant 0 : index
    %c0_9 = arith.constant 0 : index
    %33 = vector.load %arg2[%c1, %c0_8, %c0_9] : memref<3x32x32xf32, #tpu.memory_space<vmem>>, vector<1x32x32xf32>
    %34 = vector.shape_cast %33 : vector<1x32x32xf32> to vector<32x32xf32>
    %cst_10 = arith.constant dense<0.000000e+00> : vector<16x32xf32>
    %35 = tpu.matmul %32, %34, %cst_10 {dimension_numbers = #tpu.dot_dimension_numbers<[1], [0], [0], [1], [0, 0, 1, 1], [], []>} : vector<16x32xf32>, vector<32x32xf32>, vector<16x32xf32> -> vector<16x32xf32>
    %36 = vector.extract_strided_slice %3 {offsets = [1, 0], sizes = [1, 32], strides = [1, 1]} : vector<3x32xf32> to vector<1x32xf32>
    %37 = vector.broadcast %36 : vector<1x32xf32> to vector<16x32xf32>
    %38 = arith.addf %35, %37 : vector<16x32xf32>
    %39 = vector.extract_strided_slice %13 {offsets = [1, 0], sizes = [1, 32], strides = [1, 1]} : vector<3x32xf32> to vector<1x32xf32>
    %40 = vector.broadcast %39 : vector<1x32xf32> to vector<16x32xf32>
    %41 = arith.mulf %38, %40 : vector<16x32xf32>
    %42 = vector.extract_strided_slice %18 {offsets = [1, 0], sizes = [1, 32], strides = [1, 1]} : vector<3x32xf32> to vector<1x32xf32>
    %43 = vector.broadcast %42 : vector<1x32xf32> to vector<16x32xf32>
    %44 = arith.addf %41, %43 : vector<16x32xf32>
    %45 = math.tanh %44 : vector<16x32xf32>
    %c2 = arith.constant 2 : index
    %c0_11 = arith.constant 0 : index
    %c0_12 = arith.constant 0 : index
    %46 = vector.load %arg2[%c2, %c0_11, %c0_12] : memref<3x32x32xf32, #tpu.memory_space<vmem>>, vector<1x32x32xf32>
    %47 = vector.shape_cast %46 : vector<1x32x32xf32> to vector<32x32xf32>
    %cst_13 = arith.constant dense<0.000000e+00> : vector<16x32xf32>
    %48 = tpu.matmul %45, %47, %cst_13 {dimension_numbers = #tpu.dot_dimension_numbers<[1], [0], [0], [1], [0, 0, 1, 1], [], []>} : vector<16x32xf32>, vector<32x32xf32>, vector<16x32xf32> -> vector<16x32xf32>
    %49 = vector.extract_strided_slice %3 {offsets = [2, 0], sizes = [1, 32], strides = [1, 1]} : vector<3x32xf32> to vector<1x32xf32>
    %50 = vector.broadcast %49 : vector<1x32xf32> to vector<16x32xf32>
    %51 = arith.addf %48, %50 : vector<16x32xf32>
    %52 = vector.extract_strided_slice %13 {offsets = [2, 0], sizes = [1, 32], strides = [1, 1]} : vector<3x32xf32> to vector<1x32xf32>
    %53 = vector.broadcast %52 : vector<1x32xf32> to vector<16x32xf32>
    %54 = arith.mulf %51, %53 : vector<16x32xf32>
    %55 = vector.extract_strided_slice %18 {offsets = [2, 0], sizes = [1, 32], strides = [1, 1]} : vector<3x32xf32> to vector<1x32xf32>
    %56 = vector.broadcast %55 : vector<1x32xf32> to vector<16x32xf32>
    %57 = arith.addf %54, %56 : vector<16x32xf32>
    %c0_14 = arith.constant 0 : index
    %c0_15 = arith.constant 0 : index
    %58 = vector.load %arg4[%c0_14, %c0_15] : memref<16x32xf32, #tpu.memory_space<vmem>>, vector<16x32xf32>
    tpu.vector_store %arg4[%c0_14, %c0_15], %57 {strides = array<i32>} : memref<16x32xf32, #tpu.memory_space<vmem>>, vector<16x32xf32>,
    return
  }
}

</mosaic_0001>

<bundles_post_ra>
// kernel: diffeq_pallas.1
= control target key start
LH: loop header
LB: loop body
LE: loop exit
PB: predicated region body
PF: predicated region fallthrough
CT: control target
= control target key end

     0   :  { %10 = vsyncpa [#allocation4], 0  ;;  %s260_s18 = smov [#allocation3]   ;;  %s261_s20 = smov 128   ;;  %s325_s0 = inlined_call_operand.<no memory space> [shape: f32[1], index: 0, kind: input, shape index: {}]   ;;  %s326_s1 = inlined_call_operand.vmem [shape: f32[16,4], index: 1, kind: input, shape index: {}]   ;;  %s327_s2 = inlined_call_operand.hbm [shape: f32[3,32,32], index: 2, kind: input, shape index: {}]   ;;  %s328_s3 = inlined_call_operand.vmem [shape: f32[15,32], index: 3, kind: input, shape index: {}]   ;;  %s329_s4 = inlined_call_operand.vmem [shape: f32[16,32], index: 4, kind: output, shape index: {}]  }
   0x1   :  { %s19_s17 = sshll.u32 %s327_s2, 4  ;;  %s21_s19 = sshll.u32 %s260_s18, 4  ;;  %s20_s17 = int_to_ptr.hbm [resolvable:$true] %s19_s17  ;;  %s22_s19 = int_to_ptr.vmem [resolvable:$true] %s21_s19 }
   0x2   :  { %s262_s21 = smov 8  }
   0x3   :  { %27 = dma.hbm_to_vmem [thread:$0]  %s20_s17, 1536, %s22_s19, [#allocation4], %s261_s20, %s261_s20, %s262_s21  }
   0x4   :  { %258 = dma.done.wait [#allocation4], 1536  }
   0x5   :  { %259 = vsyncadd [#allocation4], 4294965760  ;;  %vm80_vm0 = vcmask 1043456   ;;  %vm73_vm1 = vcmask 31744   ;;  %v71_v0 = vld [vmem:[#allocation3] sm:$0xff]  ;;  %v36_v2 = vld [vmem:[%s326_s1 + $0x8] sm:$0xff]  ;;  %v39_v5 = vstv %s325_s0 }
   0x6   :  { %v35_v1 = vld [vmem:[%s326_s1] sm:$0xff]  ;;  %208 = vmatpush.msk.msra.mxu0 %vm80_vm0, %v71_v0  ;;  %v38_v4 = vld [vmem:[%s328_s3 + $0x8] sm:$0x7f]  ;;  %vm43_vm2 = vcmask 1044480   ;;  %v119_v15 = vld [vmem:[#allocation3 + $0x38] sm:$0xff]  ;;  %vm121_vm7 = vcmask 261120  }
   0x7   :  { %209 = vmatmul.msk.f32.vlgmr.msra.gmra.mxu0 %vm73_vm1, %v35_v1  ;;  %v300_v3 = vld [vmem:[%s328_s3] sm:$0xff]  ;;  %v45_v7 = vrot.slane %v38_v4, 3  ;;  %140 = vmatpush.msra.mxu1 %v119_v15  ;;  %v118_v16 = vld [vmem:[#allocation3 + $0x30] sm:$0xff]  ;;  %v117_v18 = vld [vmem:[#allocation3 + $0x28] sm:$0xff]  ;;  %v68_v27 = vmul.f32 %v39_v5, %v38_v4 }
   0x8   :  { %v44_v6 = vrot.slane %v300_v3, 3  ;;  %v40_v8 = vmul.f32 %v39_v5, %v300_v3  ;;  %215 = vmatpush.msra.mxu3 %v119_v15  ;;  %v116_v19 = vld [vmem:[#allocation3 + $0x20] sm:$0xff]  ;;  %v72_v30 = vperm.slane %v300_v3, 0  ;;  %v163_v43 = vld [vmem:[#allocation3 + $0x58] sm:$0xff]  ;;  %v162_v44 = vld [vmem:[#allocation3 + $0x50] sm:$0xff]  ;;  %v120_v47 = vperm.slane %v300_v3, 1 }
   0x9   :  { %141 = vmatpush.msra.mxu1 %v118_v16  ;;  %v70_v29 = vadd.f32 %v68_v27, %v45_v7  ;;  %183 = vmatpush.msra.mxu2 %v163_v43  ;;  %v161_v45 = vld [vmem:[#allocation3 + $0x48] sm:$0xff]  ;;  %v160_v46 = vld [vmem:[#allocation3 + $0x40] sm:$0xff]  ;;  %v164_v60 = vperm.slane %v300_v3, 2 }
   0xa   :  { %v46_v9 = vsel %vm43_vm2, %v44_v6, %v45_v7  ;;  %216 = vmatpush.msra.mxu3 %v118_v16 }
   0xb   :  { %v48_v10 = vadd.f32 %v46_v9, %v40_v8  ;;  %142 = vmatpush.msra.mxu1 %v117_v18  ;;  %v110_v34 = vperm.slane %v70_v29, 1  ;;  %184 = vmatpush.msra.mxu2 %v162_v44  ;;  %v154_v51 = vperm.slane %v70_v29, 2  ;;  %v197_v0 = vperm.slane %v70_v29, 3 }
   0xc   :  { %217 = vmatpush.msra.mxu3 %v117_v18 }
   0xd   :  { %v207_v11 = vmul.f32 -1.442695, %v48_v10  ;;  %143 = vmatpush.msra.mxu1 %v116_v19  ;;  %185 = vmatpush.msra.mxu2 %v161_v45 }
   0xe   :  { %218 = vmatpush.msra.mxu3 %v116_v19 }
   0xf   :  { %210 = vmatmul.msk.f32.gmra.mxu0 %vm73_vm1, %v36_v2  ;;  %222 = vpow2.f32 %v207_v11  ;;  %186 = vmatpush.msra.mxu2 %v160_v46 }
  0x15   :  { %v223_v12 = vpop.eup %222 }
  0x16   :  { %v52_v13 = vadd.f32 1.0, %v223_v12 }
  0x18   :  { %224 = vrcp.f32 %v52_v13  ;;  %vm58_vm3 = vweird.f32 %v52_v13  ;;  %v64_v22 = vand.u32 2147483648, %v52_v13  ;;  %v62_v24 = vand.u32 2147483647, %v52_v13 }
  0x1a   :  { %v65_v25 = vor.u32 1.1754944e-38, %v64_v22  ;;  %vm63_vm6 = vcmp.eq.f32.partialorder %v62_v24, 8.507059e+37 }
  0x1e   :  { %v225_v14 = vpop.eup %224 }
  0x1f   :  { %v54_v17 = vmul.f32 %v225_v14, %v52_v13  ;;  %vm59_vm4 = vweird.f32 %v225_v14 }
  0x20   :  { %vm60_vm5 = vmor %vm58_vm3, %vm59_vm4 }
  0x21   :  { %v55_v20 = vsub.f32 1.0, %v54_v17 }
  0x23   :  { %v56_v21 = vmul.f32 %v225_v14, %v55_v20 }
  0x25   :  { %v57_v23 = vadd.f32 %v225_v14, %v56_v21 }
  0x27   :  { %v61_v26 = vsel %vm60_vm5, %v225_v14, %v57_v23 }
  0x28   :  { %v66_v28 = vsel %vm63_vm6, %v65_v25, %v61_v26 }
  0x29   :  { %v107_v31 = vperm.slane %v66_v28, 3  ;;  %v151_v48 = vperm.slane %v66_v28, 4  ;;  %v194_v61 = vperm.slane %v66_v28, 5 }
  0x84   :  { %v101_v32 = vpop.f32.mrf.mxu0 }
  0x85   :  { %v102_v33 = vadd.f32 %v101_v32, %v72_v30 }
  0x87   :  { %v108_v35 = vmul.f32 %v107_v31, %v102_v33 }
  0x89   :  { %v111_v36 = vadd.f32 %v110_v34, %v108_v35 }
  0x8b   :  { %226 = vtanh.f32 %v111_v36 }
  0x8c   :  { %v104_v37 = vpop.f32.mrf.mxu0 }
  0x8d   :  { %v105_v38 = vadd.f32 %v104_v37, %v72_v30 }
  0x8f   :  { %v109_v39 = vmul.f32 %v107_v31, %v105_v38 }
  0x91   :  { %v227_v40 = vpop.eup %226  ;;  %v112_v41 = vadd.f32 %v110_v34, %v109_v39 }
  0x92   :  { %211 = vmatmul.msk.f32.vlgmr.msra.gmra.mxu1 %vm121_vm7, %v227_v40 }
  0x93   :  { %228 = vtanh.f32 %v112_v41 }
  0x99   :  { %v229_v42 = vpop.eup %228 }
  0x9a   :  { %212 = vmatmul.msk.f32.vlgmr.msra.gmra.mxu3 %vm121_vm7, %v229_v42 }
 0x10f   :  { %v145_v49 = vpop.f32.mrf.mxu1 }
 0x110   :  { %v146_v50 = vadd.f32 %v145_v49, %v120_v47 }
 0x112   :  { %v152_v52 = vmul.f32 %v151_v48, %v146_v50 }
 0x114   :  { %v155_v53 = vadd.f32 %v154_v51, %v152_v52 }
 0x116   :  { %230 = vtanh.f32 %v155_v53 }
 0x11c   :  { %v231_v54 = vpop.eup %230 }
 0x11d   :  { %v148_v55 = vpop.f32.mrf.mxu3  ;;  %213 = vmatmul.msk.f32.vlgmr.msra.gmra.mxu2 %vm121_vm7, %v231_v54 }
 0x11e   :  { %v149_v56 = vadd.f32 %v148_v55, %v120_v47 }
 0x120   :  { %v153_v57 = vmul.f32 %v151_v48, %v149_v56 }
 0x122   :  { %v156_v58 = vadd.f32 %v154_v51, %v153_v57 }
 0x124   :  { %232 = vtanh.f32 %v156_v58 }
 0x12a   :  { %v233_v59 = vpop.eup %232 }
 0x12b   :  { %214 = vmatmul.msk.f32.gmra.mxu2 %vm121_vm7, %v233_v59 }
 0x1a0   :  { %v188_v62 = vpop.f32.mrf.mxu2 }
 0x1a1   :  { %v189_v63 = vadd.f32 %v188_v62, %v164_v60 }
 0x1a3   :  { %v195_v1 = vmul.f32 %v194_v61, %v189_v63 }
 0x1a5   :  { %v198_v2 = vadd.f32 %v197_v0, %v195_v1 }
 0x1a7   :  { %200 = vst.msk [vmem:[%s329_s4] sm:$0xff] %vm121_vm7, %v198_v2 }
 0x1ae   :  { %v191_v4 = vpop.f32.mrf.mxu2 }
 0x1af   :  { %v192_v5 = vadd.f32 %v191_v4, %v164_v60 }
 0x1b1   :  { %v196_v6 = vmul.f32 %v194_v61, %v192_v5 }
 0x1b3   :  { %v199_v7 = vadd.f32 %v197_v0, %v196_v6 }
 0x1b5   :  { %201 = vst.msk [vmem:[%s329_s4 + $0x8] sm:$0xff] %vm121_vm7, %v199_v7 }
 0x1b6   :  { %206 = vsyncpa [#allocation4], 1 }

</bundles_post_ra>
